<compile_context>
chip_gen: v5e
topology: v5e:2x2
jax: 0.10.0
libtpu: 0.0.40
codegen_flags: <defaults>
</compile_context>

<pallas_src>
import functools

import jax
import jax.numpy as jnp
from jax import lax
from jax.experimental import pallas as pl
from jax.experimental.pallas import tpu as pltpu

T_MC = 30            # self.T
T_PAD = 32           # padded to a full sublane multiple
NUM_CLASSES = 2      # self.num_classes
LANE = 128
BLOCK_N_MAX = 32768  # lanes per grid step; ~9 MiB double-buffered f32 -> v7x safe
_PAD_BIG = 1.0e4     # padded columns: logit[true] - logit[other] = 2*BIG -> softplus = 0


def _round_up(x, m):
    return (x + m - 1) // m * m


def _softplus(x):
    # Numerically stable softplus; matches the log-softmax CE closed form.
    return jnp.maximum(x, 0.0) + jnp.log(1.0 + jnp.exp(-jnp.abs(x)))


def _bcce_kernel(rows_ref, eps_ref, out_ref,
                 acc_und_ref, acc_dep_ref, acc_dist_ref, *, n_valid):
    """Lane-dense layout: batch on lanes; (l0, l1, true, var) on 4 sublanes of
    `rows_ref`; the T Monte-Carlo samples on 32 sublanes of `eps_ref`."""
    i = pl.program_id(0)

    @pl.when(i == 0)
    def _init():
        acc_und_ref[...] = jnp.zeros_like(acc_und_ref)
        acc_dep_ref[...] = jnp.zeros_like(acc_dep_ref)
        acc_dist_ref[...] = jnp.zeros_like(acc_dist_ref)

    rows = rows_ref[...].astype(jnp.float32)          # (4, block_n)
    l0 = rows[0:1, :]
    l1 = rows[1:2, :]
    tru = rows[2:3, :]                                # class index as 0./1.
    var = rows[3:4, :]

    eps_diff = eps_ref[...].astype(jnp.float32)       # (T_PAD, block_n)

    sign = 2.0 * tru - 1.0                            # -1 -> true class 0, +1 -> class 1
    d = sign * (l0 - l1)                              # logit[other] - logit[true];
                                                      # the module's +1e-15 cancels here
    std = jnp.sqrt(var) + 1e-15                       # (1, block_n)

    # Closed-form binary CE per row; batch padding contributes exactly zero
    # (d = -2*BIG on padded columns, var = 0 there).
    und_row = _softplus(d)                            # (1, block_n)
    dep_row = jnp.exp(var) - 1.0                      # (1, block_n)

    # All T Monte-Carlo samples in one batched elementwise pass.
    dist_rows = _softplus(d + eps_diff * (sign * std))  # (T_PAD, block_n)

    # Accumulate global sums across the batch grid.
    acc_und_ref[...] += jnp.sum(und_row, axis=-1, keepdims=True)     # (1, 1)
    acc_dep_ref[...] += jnp.sum(dep_row, axis=-1, keepdims=True)     # (1, 1)
    acc_dist_ref[...] += jnp.sum(dist_rows, axis=-1, keepdims=True)  # (T_PAD, 1)

    @pl.when(i == pl.num_programs(0) - 1)
    def _finalize():
        inv_n = jnp.float32(1.0 / n_valid)
        und = acc_und_ref[...] * inv_n                # (1, 1) undistorted loss
        dep = acc_dep_ref[...] * inv_n                # (1, 1) mean variance depressor
        dist = acc_dist_ref[...] * inv_n              # (T_PAD, 1) distorted losses
        diff = und - dist                             # (T_PAD, 1)
        # ELU; exp() evaluated on min(diff, 0) so the untaken branch cannot overflow.
        elu = jnp.where(diff > 0.0, diff, jnp.exp(jnp.minimum(diff, 0.0)) - 1.0)
        # Only the first T_MC rows are real samples.
        t_mask = (lax.broadcasted_iota(jnp.int32, (T_PAD, 1), 0) < T_MC
                  ).astype(jnp.float32)
        mc_mean = jnp.sum(-elu * t_mask, axis=0, keepdims=True) * jnp.float32(1.0 / T_MC)
        out_ref[...] = mc_mean * und + und + dep


@functools.partial(jax.jit, static_argnames=("n_valid", "block_n"))
def _bcce_pallas(rows, eps_diff, *, n_valid, block_n):
    n_pad = rows.shape[1]
    n_blocks = n_pad // block_n

    grid_spec = pltpu.PrefetchScalarGridSpec(
        num_scalar_prefetch=0,
        grid=(n_blocks,),
        in_specs=[pl.BlockSpec((4, block_n), lambda i: (0, i)),
                  pl.BlockSpec((T_PAD, block_n), lambda i: (0, i))],
        out_specs=pl.BlockSpec((1, 1), lambda i: (0, 0)),
        scratch_shapes=[pltpu.VMEM((1, 1), jnp.float32),       # sum undistorted CE
                        pltpu.VMEM((1, 1), jnp.float32),       # sum exp(var) - 1
                        pltpu.VMEM((T_PAD, 1), jnp.float32)])  # per-sample dist. sums

    out = pl.pallas_call(
        functools.partial(_bcce_kernel, n_valid=n_valid),
        out_shape=jax.ShapeDtypeStruct((1, 1), jnp.float32),
        grid_spec=grid_spec,
        compiler_params=pltpu.CompilerParams(
            dimension_semantics=("arbitrary",),   # carried accumulators across grid
            vmem_limit_bytes=48 * 1024 * 1024),
    )(rows, eps_diff)
    return out[0, 0]


def bayesian_categorical_crossentropy(logit, var, true, eps=None, key=None,
                                      stream_eps_in_bf16=False,
                                      block_n_max=BLOCK_N_MAX):
    """Forward pass of the PyTorch module.

    logit: (N, 2), var: (N, 1) or (N,), true: (N,) int class ids.
    eps: optional (T, N, 2) standard-normal draws (exactly verifiable path);
    otherwise draws come from `key` via jax.random (different stream than torch).
    stream_eps_in_bf16: stream the Monte-Carlo noise as bf16 (halves the only
    large HBM stream; breaks bit-exact parity with the f32 reference).
    """
    n, c = logit.shape
    assert c == NUM_CLASSES == 2, "closed-form binary CE kernel expects 2 classes"
    assert block_n_max % LANE == 0

    block_n = _round_up(max(n, 1), LANE) if n <= block_n_max else block_n_max
    n_pad = _round_up(n, block_n)
    pad = n_pad - n

    # Fused per-row inputs, lane-dense (batch on lanes).  Padded columns get
    # logits that force d = logit[other]-logit[true] << 0 (softplus -> exact 0)
    # and var = 0 (exp(var)-1 -> exact 0), so no in-kernel masking is needed.
    l0 = jnp.pad(logit[:, 0].astype(jnp.float32), (0, pad), constant_values=_PAD_BIG)
    l1 = jnp.pad(logit[:, 1].astype(jnp.float32), (0, pad), constant_values=-_PAD_BIG)
    tru = jnp.pad(true.astype(jnp.float32), (0, pad))
    varf = jnp.pad(var.reshape(-1).astype(jnp.float32), (0, pad))
    rows = jnp.stack([l0, l1, tru, varf], axis=0)                 # (4, n_pad)

    # Single Monte-Carlo stream: eps_diff = eps[class 0] - eps[class 1].
    if eps is None:
        if key is None:
            key = jax.random.PRNGKey(0)
        # e0 - e1 ~ N(0, 2): one sqrt(2)-scaled draw instead of two draws.
        eps_diff = jnp.sqrt(2.0) * jax.random.normal(key, (T_MC, n), dtype=jnp.float32)
    else:
        eps_diff = (eps[:, :, 0].astype(jnp.float32)
                    - eps[:, :, 1].astype(jnp.float32))           # (T, N)
    if stream_eps_in_bf16:
        eps_diff = eps_diff.astype(jnp.bfloat16)
    eps_diff = jnp.pad(eps_diff, ((0, T_PAD - T_MC), (0, pad)))   # (T_PAD, n_pad)

    return _bcce_pallas(rows, eps_diff, n_valid=n, block_n=block_n)


def reference(logit, var, true, eps):
    """Pure-JAX mirror of the PyTorch module (verification only)."""
    onehot = jax.nn.one_hot(true, NUM_CLASSES, dtype=jnp.float32)
    logits0 = logit.astype(jnp.float32) + 1e-15
    var = var.astype(jnp.float32)

    def ce(l):
        return jnp.mean(jax.nn.logsumexp(l, axis=-1) - jnp.sum(onehot * l, axis=-1))

    und = ce(logits0)
    std = jnp.sqrt(var) + 1e-15            # (N, 1)
    var_depressor = jnp.exp(var) - 1.0     # (N, 1)

    def one_sample(e):                     # e: (N, C) standard-normal draws
        dloss = ce(logits0 + e * std)
        diff = und - dloss
        return -jnp.where(diff > 0.0, diff, jnp.exp(diff) - 1.0)

    mc = jax.vmap(one_sample)(eps)         # (T,)
    variance_loss = jnp.mean(mc) * und
    return jnp.mean(variance_loss + und + var_depressor)


if __name__ == "__main__":
    key = jax.random.PRNGKey(0)
    k1, k2, k3, k4, k5, k6, k7, k8, k9 = jax.random.split(key, 9)

    # Small batch, bit-verifiable against the pure-JAX reference (caller eps).
    N = 8
    logit = jax.random.normal(k1, (N, NUM_CLASSES), dtype=jnp.float32)
    var = jnp.abs(jax.random.normal(k2, (N, 1), dtype=jnp.float32)) * 0.5
    true = jax.random.randint(k3, (N,), 0, NUM_CLASSES, dtype=jnp.int32)
    eps = jax.random.normal(k4, (T_MC, N, NUM_CLASSES), dtype=jnp.float32)

    loss = jax.block_until_ready(
        bayesian_categorical_crossentropy(logit, var, true, eps=eps))
    ref = reference(logit, var, true, eps)
    assert jnp.allclose(loss, ref, rtol=1e-4, atol=1e-5), (loss, ref)

    # Non-multiple-of-128 batch with a deliberately small tile to exercise the
    # multi-block grid, accumulator carry and batch padding.
    N2 = 700
    logit2 = jax.random.normal(k5, (N2, NUM_CLASSES), dtype=jnp.float32)
    var2 = jnp.abs(jax.random.normal(k6, (N2, 1), dtype=jnp.float32)) * 0.5
    true2 = jax.random.randint(k7, (N2,), 0, NUM_CLASSES, dtype=jnp.int32)
    eps2 = jax.random.normal(k8, (T_MC, N2, NUM_CLASSES), dtype=jnp.float32)

    loss2 = jax.block_until_ready(
        bayesian_categorical_crossentropy(logit2, var2, true2, eps=eps2,
                                          block_n_max=256))
    ref2 = reference(logit2, var2, true2, eps2)
    assert jnp.allclose(loss2, ref2, rtol=1e-4, atol=1e-5), (loss2, ref2)

    # Wrapper-generated Monte-Carlo draws (jax.random; different stream than
    # torch.distributions) -> sanity check only.
    loss_rng = jax.block_until_ready(
        bayesian_categorical_crossentropy(logit, var, true, key=k9))
    assert bool(jnp.isfinite(loss_rng)), loss_rng

    # bf16 noise streaming path (bandwidth optimization) -> runs and is finite.
    loss_bf16 = jax.block_until_ready(
        bayesian_categorical_crossentropy(logit2, var2, true2, eps=eps2,
                                          stream_eps_in_bf16=True))
    assert bool(jnp.isfinite(loss_bf16)), loss_bf16

    print("KERNEL_OK")
</pallas_src>

<mosaic_0001>
module attributes {stable_mosaic.version = 11 : i64} {
  func.func @_bcce_kernel(%arg0: i32, %arg1: memref<4x128xf32, #tpu.memory_space<vmem>>, %arg2: memref<32x128xf32, #tpu.memory_space<vmem>>, %arg3: memref<1x1xf32, #tpu.memory_space<vmem>>, %arg4: memref<1x1xf32, #tpu.memory_space<vmem>>, %arg5: memref<1x1xf32, #tpu.memory_space<vmem>>, %arg6: memref<32x1xf32, #tpu.memory_space<vmem>>) attributes {dimension_semantics = [#tpu.dimension_semantics<arbitrary>], iteration_bounds = array<i64: 1>, scalar_prefetch = 0 : i64, scratch_operands = 3 : i64, tpu.core_type = #tpu.core_type<tc>, window_params = [{transform_indices = @transform_0, window_bounds = array<i64: 4, 128>}, {transform_indices = @transform_1, window_bounds = array<i64: 32, 128>}, {pipeline_mode = #tpu.pipeline_mode<synchronous>, transform_indices = @transform_2, window_bounds = array<i64: 1, 1>}]} {
    %c0_i32 = arith.constant 0 : i32
    %0 = arith.cmpi eq, %arg0, %c0_i32 : i32
    %1 = arith.extui %0 : i1 to i32
    %c0_i32_0 = arith.constant 0 : i32
    %2 = arith.cmpi ne, %1, %c0_i32_0 : i32
    scf.if %2 {
      %cst_30 = arith.constant 0.000000e+00 : f32
      %64 = vector.broadcast %cst_30 : f32 to vector<1x1xf32>
      %c0_31 = arith.constant 0 : index
      %c0_32 = arith.constant 0 : index
      %65 = vector.load %arg4[%c0_31, %c0_32] : memref<1x1xf32, #tpu.memory_space<vmem>>, vector<1x1xf32>
      tpu.vector_store %arg4[%c0_31, %c0_32], %64 {strides = array<i32>} : memref<1x1xf32, #tpu.memory_space<vmem>>, vector<1x1xf32>,
      %cst_33 = arith.constant 0.000000e+00 : f32
      %66 = vector.broadcast %cst_33 : f32 to vector<1x1xf32>
      %c0_34 = arith.constant 0 : index
      %c0_35 = arith.constant 0 : index
      %67 = vector.load %arg5[%c0_34, %c0_35] : memref<1x1xf32, #tpu.memory_space<vmem>>, vector<1x1xf32>
      tpu.vector_store %arg5[%c0_34, %c0_35], %66 {strides = array<i32>} : memref<1x1xf32, #tpu.memory_space<vmem>>, vector<1x1xf32>,
      %cst_36 = arith.constant 0.000000e+00 : f32
      %68 = vector.broadcast %cst_36 : f32 to vector<32x1xf32>
      %c0_37 = arith.constant 0 : index
      %c0_38 = arith.constant 0 : index
      %69 = vector.load %arg6[%c0_37, %c0_38] : memref<32x1xf32, #tpu.memory_space<vmem>>, vector<32x1xf32>
      tpu.vector_store %arg6[%c0_37, %c0_38], %68 {strides = array<i32>} : memref<32x1xf32, #tpu.memory_space<vmem>>, vector<32x1xf32>,
    } else {
    }
    %c0 = arith.constant 0 : index
    %c0_1 = arith.constant 0 : index
    %3 = vector.load %arg1[%c0, %c0_1] : memref<4x128xf32, #tpu.memory_space<vmem>>, vector<4x128xf32>
    %4 = vector.extract_strided_slice %3 {offsets = [0, 0], sizes = [1, 128], strides = [1, 1]} : vector<4x128xf32> to vector<1x128xf32>
    %5 = vector.extract_strided_slice %3 {offsets = [1, 0], sizes = [1, 128], strides = [1, 1]} : vector<4x128xf32> to vector<1x128xf32>
    %6 = vector.extract_strided_slice %3 {offsets = [2, 0], sizes = [1, 128], strides = [1, 1]} : vector<4x128xf32> to vector<1x128xf32>
    %7 = vector.extract_strided_slice %3 {offsets = [3, 0], sizes = [1, 128], strides = [1, 1]} : vector<4x128xf32> to vector<1x128xf32>
    %c0_2 = arith.constant 0 : index
    %c0_3 = arith.constant 0 : index
    %8 = vector.load %arg2[%c0_2, %c0_3] : memref<32x128xf32, #tpu.memory_space<vmem>>, vector<32x128xf32>
    %cst = arith.constant 2.000000e+00 : f32
    %9 = vector.broadcast %cst : f32 to vector<1x128xf32>
    %10 = arith.mulf %9, %6 : vector<1x128xf32>
    %cst_4 = arith.constant 1.000000e+00 : f32
    %11 = vector.broadcast %cst_4 : f32 to vector<1x128xf32>
    %12 = arith.subf %10, %11 : vector<1x128xf32>
    %13 = arith.subf %4, %5 : vector<1x128xf32>
    %14 = arith.mulf %12, %13 : vector<1x128xf32>
    %15 = math.sqrt %7 : vector<1x128xf32>
    %cst_5 = arith.constant 1.000000e-15 : f32
    %16 = vector.broadcast %cst_5 : f32 to vector<1x128xf32>
    %17 = arith.addf %15, %16 : vector<1x128xf32>
    %cst_6 = arith.constant 0.000000e+00 : f32
    %18 = vector.broadcast %cst_6 : f32 to vector<1x128xf32>
    %19 = arith.maximumf %14, %18 : vector<1x128xf32>
    %20 = math.absf %14 : vector<1x128xf32>
    %cst_7 = arith.constant 0.000000e+00 : f32
    %21 = vector.broadcast %cst_7 : f32 to vector<1x128xf32>
    %22 = arith.subf %21, %20 : vector<1x128xf32>
    %23 = math.exp %22 : vector<1x128xf32>
    %cst_8 = arith.constant 1.000000e+00 : f32
    %24 = vector.broadcast %cst_8 : f32 to vector<1x128xf32>
    %25 = arith.addf %24, %23 : vector<1x128xf32>
    %26 = math.log %25 : vector<1x128xf32>
    %27 = arith.addf %19, %26 : vector<1x128xf32>
    %28 = math.exp %7 : vector<1x128xf32>
    %cst_9 = arith.constant 1.000000e+00 : f32
    %29 = vector.broadcast %cst_9 : f32 to vector<1x128xf32>
    %30 = arith.subf %28, %29 : vector<1x128xf32>
    %31 = arith.mulf %12, %17 : vector<1x128xf32>
    %32 = vector.broadcast %31 : vector<1x128xf32> to vector<32x128xf32>
    %33 = arith.mulf %8, %32 : vector<32x128xf32>
    %34 = vector.broadcast %14 : vector<1x128xf32> to vector<32x128xf32>
    %35 = arith.addf %34, %33 : vector<32x128xf32>
    %cst_10 = arith.constant 0.000000e+00 : f32
    %36 = vector.broadcast %cst_10 : f32 to vector<32x128xf32>
    %37 = arith.maximumf %35, %36 : vector<32x128xf32>
    %38 = math.absf %35 : vector<32x128xf32>
    %cst_11 = arith.constant 0.000000e+00 : f32
    %39 = vector.broadcast %cst_11 : f32 to vector<32x128xf32>
    %40 = arith.subf %39, %38 : vector<32x128xf32>
    %41 = math.exp %40 : vector<32x128xf32>
    %cst_12 = arith.constant 1.000000e+00 : f32
    %42 = vector.broadcast %cst_12 : f32 to vector<32x128xf32>
    %43 = arith.addf %42, %41 : vector<32x128xf32>
    %44 = math.log %43 : vector<32x128xf32>
    %45 = arith.addf %37, %44 : vector<32x128xf32>
    %c0_13 = arith.constant 0 : index
    %c0_14 = arith.constant 0 : index
    %46 = vector.load %arg4[%c0_13, %c0_14] : memref<1x1xf32, #tpu.memory_space<vmem>>, vector<1x1xf32>
    %cst_15 = arith.constant dense<0.000000e+00> : vector<1xf32>
    %47 = vector.multi_reduction <add>, %27, %cst_15 [1] : vector<1x128xf32> to vector<1xf32>
    %48 = vector.shape_cast %47 : vector<1xf32> to vector<1x1xf32>
    %49 = arith.addf %46, %48 : vector<1x1xf32>
    %c0_16 = arith.constant 0 : index
    %c0_17 = arith.constant 0 : index
    %50 = vector.load %arg4[%c0_16, %c0_17] : memref<1x1xf32, #tpu.memory_space<vmem>>, vector<1x1xf32>
    tpu.vector_store %arg4[%c0_16, %c0_17], %49 {strides = array<i32>} : memref<1x1xf32, #tpu.memory_space<vmem>>, vector<1x1xf32>,
    %c0_18 = arith.constant 0 : index
    %c0_19 = arith.constant 0 : index
    %51 = vector.load %arg5[%c0_18, %c0_19] : memref<1x1xf32, #tpu.memory_space<vmem>>, vector<1x1xf32>
    %cst_20 = arith.constant dense<0.000000e+00> : vector<1xf32>
    %52 = vector.multi_reduction <add>, %30, %cst_20 [1] : vector<1x128xf32> to vector<1xf32>
    %53 = vector.shape_cast %52 : vector<1xf32> to vector<1x1xf32>
    %54 = arith.addf %51, %53 : vector<1x1xf32>
    %c0_21 = arith.constant 0 : index
    %c0_22 = arith.constant 0 : index
    %55 = vector.load %arg5[%c0_21, %c0_22] : memref<1x1xf32, #tpu.memory_space<vmem>>, vector<1x1xf32>
    tpu.vector_store %arg5[%c0_21, %c0_22], %54 {strides = array<i32>} : memref<1x1xf32, #tpu.memory_space<vmem>>, vector<1x1xf32>,
    %c0_23 = arith.constant 0 : index
    %c0_24 = arith.constant 0 : index
    %56 = vector.load %arg6[%c0_23, %c0_24] : memref<32x1xf32, #tpu.memory_space<vmem>>, vector<32x1xf32>
    %cst_25 = arith.constant dense<0.000000e+00> : vector<32xf32>
    %57 = vector.multi_reduction <add>, %45, %cst_25 [1] : vector<32x128xf32> to vector<32xf32>
    %58 = vector.shape_cast %57 : vector<32xf32> to vector<32x1xf32>
    %59 = arith.addf %56, %58 : vector<32x1xf32>
    %c0_26 = arith.constant 0 : index
    %c0_27 = arith.constant 0 : index
    %60 = vector.load %arg6[%c0_26, %c0_27] : memref<32x1xf32, #tpu.memory_space<vmem>>, vector<32x1xf32>
    tpu.vector_store %arg6[%c0_26, %c0_27], %59 {strides = array<i32>} : memref<32x1xf32, #tpu.memory_space<vmem>>, vector<32x1xf32>,
    %c0_i32_28 = arith.constant 0 : i32
    %61 = arith.cmpi eq, %arg0, %c0_i32_28 : i32
    %62 = arith.extui %61 : i1 to i32
    %c0_i32_29 = arith.constant 0 : i32
    %63 = arith.cmpi ne, %62, %c0_i32_29 : i32
    scf.if %63 {
      %c0_30 = arith.constant 0 : index
      %c0_31 = arith.constant 0 : index
      %64 = vector.load %arg4[%c0_30, %c0_31] : memref<1x1xf32, #tpu.memory_space<vmem>>, vector<1x1xf32>
      %cst_32 = arith.constant 1.250000e-01 : f32
      %65 = vector.broadcast %cst_32 : f32 to vector<1x1xf32>
      %66 = arith.mulf %64, %65 : vector<1x1xf32>
      %c0_33 = arith.constant 0 : index
      %c0_34 = arith.constant 0 : index
      %67 = vector.load %arg5[%c0_33, %c0_34] : memref<1x1xf32, #tpu.memory_space<vmem>>, vector<1x1xf32>
      %cst_35 = arith.constant 1.250000e-01 : f32
      %68 = vector.broadcast %cst_35 : f32 to vector<1x1xf32>
      %69 = arith.mulf %67, %68 : vector<1x1xf32>
      %c0_36 = arith.constant 0 : index
      %c0_37 = arith.constant 0 : index
      %70 = vector.load %arg6[%c0_36, %c0_37] : memref<32x1xf32, #tpu.memory_space<vmem>>, vector<32x1xf32>
      %cst_38 = arith.constant 1.250000e-01 : f32
      %71 = vector.broadcast %cst_38 : f32 to vector<32x1xf32>
      %72 = arith.mulf %70, %71 : vector<32x1xf32>
      %73 = vector.broadcast %66 : vector<1x1xf32> to vector<32x1xf32>
      %74 = arith.subf %73, %72 : vector<32x1xf32>
      %cst_39 = arith.constant 0.000000e+00 : f32
      %75 = vector.broadcast %cst_39 : f32 to vector<32x1xf32>
      %76 = arith.cmpf ogt, %74, %75 : vector<32x1xf32>
      %cst_40 = arith.constant 0.000000e+00 : f32
      %77 = vector.broadcast %cst_40 : f32 to vector<32x1xf32>
      %78 = arith.minimumf %74, %77 : vector<32x1xf32>
      %79 = math.exp %78 : vector<32x1xf32>
      %cst_41 = arith.constant 1.000000e+00 : f32
      %80 = vector.broadcast %cst_41 : f32 to vector<32x1xf32>
      %81 = arith.subf %79, %80 : vector<32x1xf32>
      %82 = arith.select %76, %74, %81 : vector<32x1xi1>, vector<32x1xf32>
      %83 = tpu.iota {dimensions = array<i32: 0>} : vector<32x1xi32>
      %c30_i32 = arith.constant 30 : i32
      %84 = vector.broadcast %c30_i32 : i32 to vector<32x1xi32>
      %85 = arith.cmpi slt, %83, %84 : vector<32x1xi32>
      %86 = arith.extui %85 : vector<32x1xi1> to vector<32x1xi32>
      %87 = arith.sitofp %86 : vector<32x1xi32> to vector<32x1xf32>
      %cst_42 = arith.constant 0.000000e+00 : f32
      %88 = vector.broadcast %cst_42 : f32 to vector<32x1xf32>
      %89 = arith.subf %88, %82 : vector<32x1xf32>
      %90 = arith.mulf %89, %87 : vector<32x1xf32>
      %cst_43 = arith.constant dense<0.000000e+00> : vector<1xf32>
      %91 = vector.multi_reduction <add>, %90, %cst_43 [0] : vector<32x1xf32> to vector<1xf32>
      %92 = vector.shape_cast %91 : vector<1xf32> to vector<1x1xf32>
      %cst_44 = arith.constant 0.0333333351 : f32
      %93 = vector.broadcast %cst_44 : f32 to vector<1x1xf32>
      %94 = arith.mulf %92, %93 : vector<1x1xf32>
      %95 = arith.mulf %94, %66 : vector<1x1xf32>
      %96 = arith.addf %95, %66 : vector<1x1xf32>
      %97 = arith.addf %96, %69 : vector<1x1xf32>
      %c0_45 = arith.constant 0 : index
      %c0_46 = arith.constant 0 : index
      %98 = vector.load %arg3[%c0_45, %c0_46] : memref<1x1xf32, #tpu.memory_space<vmem>>, vector<1x1xf32>
      tpu.vector_store %arg3[%c0_45, %c0_46], %97 {strides = array<i32>} : memref<1x1xf32, #tpu.memory_space<vmem>>, vector<1x1xf32>,
    } else {
    }
    return
  }
  func.func @transform_0(%arg0: i32) -> (i32, i32) {
    %c0_i32 = arith.constant 0 : i32
    %c0_i32_0 = arith.constant 0 : i32
    return %c0_i32, %arg0 : i32, i32
  }
  func.func @transform_1(%arg0: i32) -> (i32, i32) {
    %c0_i32 = arith.constant 0 : i32
    %c0_i32_0 = arith.constant 0 : i32
    return %c0_i32, %arg0 : i32, i32
  }
  func.func @transform_2(%arg0: i32) -> (i32, i32) {
    %c0_i32 = arith.constant 0 : i32
    %c0_i32_0 = arith.constant 0 : i32
    %c0_i32_1 = arith.constant 0 : i32
    return %c0_i32, %c0_i32_0 : i32, i32
  }
}

</mosaic_0001>

<bundles_post_ra>
// kernel: _bcce_pallas.1
= control target key start
LH: loop header
LB: loop body
LE: loop exit
PB: predicated region body
PF: predicated region fallthrough
CT: control target
= control target key end

     0   :  { %7 = vsyncpa [#allocation6], 0  ;;  %s488_s0 = inlined_call_operand.hbm [shape: f32[4,128], index: 0, kind: input, shape index: {}]   ;;  %s489_s1 = inlined_call_operand.hbm [shape: f32[32,128], index: 1, kind: input, shape index: {}]   ;;  %s490_s2 = inlined_call_operand.hbm [shape: f32[1,1], index: 2, kind: output, shape index: {}]  }
   0x1   :  { %8 = vsyncpa [#allocation9], 0 }
   0x2   :  { %9 = vsyncpa [#allocation7], 0  ;;  %s15_s11 = sshll.u32 %s488_s0, 4  ;;  %s416_s12 = smov [#allocation5]   ;;  %s16_s11 = int_to_ptr.hbm [resolvable:$true] %s15_s11 }
   0x3   :  { %s17_s13 = sshll.u32 %s416_s12, 4  ;;  %s25_s16 = sshll.u32 %s489_s1, 4  ;;  %s18_s13 = int_to_ptr.vmem [resolvable:$true] %s17_s13  ;;  %s26_s16 = int_to_ptr.hbm [resolvable:$true] %s25_s16 }
   0x4   :  { %20 = dma.hbm_to_vmem [thread:$0]  %s16_s11, 64, %s18_s13, [#allocation6]  }
   0x5   :  { %s417_s17 = smov [#allocation8]   ;;  %s418_s19 = smov 128  }
   0x6   :  { %s27_s18 = sshll.u32 %s417_s17, 4  ;;  %s419_s20 = smov 8   ;;  %s28_s18 = int_to_ptr.vmem [resolvable:$true] %s27_s18 }
   0x7   :  { %33 = dma.hbm_to_vmem [thread:$0]  %s26_s16, 512, %s28_s18, [#allocation9], %s418_s19, %s418_s19, %s419_s20  }
   0x8   :  { %410 = dma.done.wait [#allocation6], 64  }
   0x9   :  { %411 = vsyncadd [#allocation6], 4294967232 }
   0xa   :  { %412 = dma.done.wait [#allocation9], 512  }
   0xb   :  { %413 = vsyncadd [#allocation9], 4294966784  ;;  %v443_v0 = vld [vmem:[#allocation5] sm:$0xf]  ;;  %v56_v26 = vld [vmem:[#allocation8 + $0x8] sm:$0xff]  ;;  %vm145_vm2 = vcmask 1042434  }
   0xc   :  { %v59_v1 = vmul.f32 2.0, %v443_v0  ;;  %v62_v2 = vrot.slane %v443_v0, 1  ;;  %306 = vrsqrt.f32 %v443_v0  ;;  %vm76_vm0 = vcmp.eq.f32.partialorder %v443_v0, inf  ;;  %v58_v25 = vld [vmem:[#allocation8 + $0x18] sm:$0xff]  ;;  %v55_v27 = vld [vmem:[#allocation8] sm:$0xff]  ;;  %v57_v28 = vld [vmem:[#allocation8 + $0x10] sm:$0xff] }
   0xd   :  { %v79_v16 = vand.u32 2147483648, %v443_v0  ;;  %vm78_vm1 = vcmp.eq.f32.partialorder %v443_v0, 0.0  ;;  %vm46_vm3 = vcmask 0   ;;  %v420_v55 = vmov 0.0   ;;  %s421_s0 = smov [#allocation10]   ;;  %s282_s23 = sshll.u32 %s490_s2, 4  ;;  %s283_s23 = int_to_ptr.hbm [resolvable:$true] %s282_s23 }
   0xe   :  { %v293_v3 = vadd.f32 -1.0, %v59_v1  ;;  %v64_v4 = vsub.f32 %v443_v0, %v62_v2  ;;  %47 = vst.msk [vmem:[#allocation2] sm:$0x1] %vm46_vm3, %v420_v55  ;;  %v91_v57 = vmul.f32 1.442695, %v443_v0  ;;  %vm156_vm4 = vcmask 1043459  }
   0xf   :  { %48 = vst.msk [vmem:[#allocation3] sm:$0x1] %vm46_vm3, %v420_v55  ;;  %vm49_vm5 = vcmask 7168   ;;  %s280_s1 = sshll.u32 %s421_s0, 4  ;;  %s281_s1 = int_to_ptr.vmem [resolvable:$true] %s280_s1 }
  0x10   :  { %v66_v5 = vrot.slane %v64_v4, 6  ;;  %53 = vst.msk [vmem:[#allocation4 + $0x18] sm:$0xff] %vm49_vm5, %v420_v55 }
  0x11   :  { %50 = vst.msk [vmem:[#allocation4] sm:$0xff] %vm49_vm5, %v420_v55 }
  0x12   :  { %v307_v6 = vpop.eup %306  ;;  %v68_v7 = vmul.f32 %v293_v3, %v66_v5  ;;  %51 = vst.msk [vmem:[#allocation4 + $0x8] sm:$0xff] %vm49_vm5, %v420_v55 }
  0x13   :  { %v70_v8 = vmul.f32 %v307_v6, %v443_v0  ;;  %52 = vst.msk [vmem:[#allocation4 + $0x10] sm:$0xff] %vm49_vm5, %v420_v55 }
  0x14   :  { %v83_v9 = vand.u32 2147483647, %v68_v7  ;;  %v103_v30 = vperm.slane %v68_v7, 2  ;;  %v82_v31 = vmax.f32 %v68_v7, 0.0 }
  0x15   :  { %v71_v10 = vmul.f32 %v307_v6, %v70_v8 }
  0x16   :  { %v84_v11 = vsub.f32 0.0, %v83_v9 }
  0x17   :  { %v72_v12 = vmul.f32 0.5, %v71_v10 }
  0x18   :  { %v85_v13 = vmul.f32 1.442695, %v84_v11 }
  0x19   :  { %v73_v14 = vsub.f32 1.5, %v72_v12 }
  0x1a   :  { %308 = vpow2.f32 %v85_v13 }
  0x1b   :  { %v74_v15 = vmul.f32 %v307_v6, %v73_v14 }
  0x1d   :  { %v75_v17 = vmul.f32 %v74_v15, %v443_v0 }
  0x1f   :  { %v77_v18 = vsel %vm76_vm0, %v443_v0, %v75_v17 }
  0x20   :  { %v309_v19 = vpop.eup %308  ;;  %v80_v20 = vsel %vm78_vm1, %v79_v16, %v77_v18 }
  0x21   :  { %v81_v21 = vadd.f32 1e-15, %v80_v20  ;;  %v87_v22 = vadd.f32 1.0, %v309_v19 }
  0x23   :  { %310 = vlog2.f32 %v87_v22  ;;  %v95_v23 = vrot.slane %v81_v21, 1  ;;  %v144_v22 = vld [vmem:[#allocation2] sm:$0x1] }
  0x25   :  { %v97_v24 = vmul.f32 %v293_v3, %v95_v23 }
  0x27   :  { %v98_v29 = vperm.slane %v97_v24, 2 }
  0x29   :  { %v311_v32 = vpop.eup %310  ;;  %v102_v33 = vmul.f32 %v98_v29, %v58_v25  ;;  %v100_v34 = vmul.f32 %v98_v29, %v56_v26  ;;  %v99_v35 = vmul.f32 %v98_v29, %v55_v27  ;;  %v101_v36 = vmul.f32 %v98_v29, %v57_v28  ;;  %v168_v25 = vld [vmem:[#allocation4 + $0x18] sm:$0xff]  ;;  %v166_v26 = vld [vmem:[#allocation4 + $0x8] sm:$0xff]  ;;  %v165_v28 = vld [vmem:[#allocation4] sm:$0xff] }
  0x2a   :  { %v89_v37 = vmul.f32 0.6931472, %v311_v32 }
  0x2b   :  { %v107_v38 = vadd.f32 %v103_v30, %v102_v33  ;;  %v105_v39 = vadd.f32 %v103_v30, %v100_v34  ;;  %v104_v40 = vadd.f32 %v103_v30, %v99_v35  ;;  %v106_v41 = vadd.f32 %v103_v30, %v101_v36  ;;  %v167_v36 = vld [vmem:[#allocation4 + $0x10] sm:$0xff] }
  0x2c   :  { %v90_v42 = vadd.f32 %v89_v37, %v82_v31 }
  0x2d   :  { %v115_v43 = vand.u32 2147483647, %v107_v38  ;;  %v113_v44 = vand.u32 2147483647, %v105_v39  ;;  %v112_v46 = vand.u32 2147483647, %v104_v40 }
  0x2e   :  { %v146_v45 = vsel %vm145_vm2, %v90_v42, 0.0  ;;  %v114_v49 = vand.u32 2147483647, %v106_v41  ;;  %v111_v4 = vmax.f32 %v107_v38, 0.0  ;;  %v109_v6 = vmax.f32 %v105_v39, 0.0 }
  0x2f   :  { %147 = vadd.xlane.f32.xlu0 %v146_v45  ;;  %v119_v47 = vsub.f32 0.0, %v115_v43  ;;  %v117_v48 = vsub.f32 0.0, %v113_v44  ;;  %v116_v50 = vsub.f32 0.0, %v112_v46  ;;  %v108_v0 = vmax.f32 %v104_v40, 0.0  ;;  %v155_v38 = vld [vmem:[#allocation3] sm:$0x1] }
  0x30   :  { %v118_v53 = vsub.f32 0.0, %v114_v49  ;;  %v110_v16 = vmax.f32 %v106_v41, 0.0 }
  0x31   :  { %v126_v51 = vmul.f32 1.442695, %v119_v47  ;;  %v122_v52 = vmul.f32 1.442695, %v117_v48  ;;  %v120_v54 = vmul.f32 1.442695, %v116_v50 }
  0x32   :  { %v124_v56 = vmul.f32 1.442695, %v118_v53 }
  0x33   :  { %312 = vpow2.f32 %v126_v51 }
  0x34   :  { %314 = vpow2.f32 %v122_v52 }
  0x35   :  { %316 = vpow2.f32 %v120_v54 }
  0x36   :  { %318 = vpow2.f32 %v124_v56 }
  0x37   :  { %320 = vpow2.f32 %v91_v57 }
  0x39   :  { %v313_v58 = vpop.eup %312 }
  0x3a   :  { %v315_v59 = vpop.eup %314  ;;  %v131_v60 = vadd.f32 1.0, %v313_v58 }
  0x3b   :  { %v317_v61 = vpop.eup %316  ;;  %v129_v62 = vadd.f32 1.0, %v315_v59 }
  0x3c   :  { %v319_v63 = vpop.eup %318  ;;  %322 = vlog2.f32 %v131_v60  ;;  %v128_v1 = vadd.f32 1.0, %v317_v61 }
  0x3d   :  { %324 = vlog2.f32 %v129_v62  ;;  %v130_v2 = vadd.f32 1.0, %v319_v63  ;;  %v321_v3 = vpop.eup %320  ;;  %v232_v62 = vlaneseq }
  0x3e   :  { %326 = vlog2.f32 %v128_v1  ;;  %v294_v18 = vadd.f32 -1.0, %v321_v3 }
  0x3f   :  { %328 = vlog2.f32 %v130_v2  ;;  %v233_v2 = vshrl.u32 %v232_v62, 7 }
  0x40   :  { %v157_v20 = vsel %vm156_vm4, %v294_v18, 0.0 }
  0x42   :  { %v323_v5 = vpop.eup %322 }
  0x43   :  { %v325_v7 = vpop.eup %324  ;;  %v139_v8 = vmul.f32 0.6931472, %v323_v5 }
  0x44   :  { %v327_v9 = vpop.eup %326  ;;  %v135_v10 = vmul.f32 0.6931472, %v325_v7 }
  0x45   :  { %v329_v11 = vpop.eup %328  ;;  %v143_v12 = vadd.f32 %v139_v8, %v111_v4  ;;  %v133_v13 = vmul.f32 0.6931472, %v327_v9  ;;  %v236_v9 = vadd.s32 24, %v233_v2 }
  0x46   :  { %v141_v14 = vadd.f32 %v135_v10, %v109_v6  ;;  %v137_v17 = vmul.f32 0.6931472, %v329_v11 }
  0x47   :  { %175 = vadd.xlane.f32.xlu2 %v143_v12  ;;  %v140_v15 = vadd.f32 %v133_v13, %v108_v0  ;;  %vm240_vm9 = vcmp.lt.s32.totalorder %v236_v9, 30 }
  0x48   :  { %171 = vadd.xlane.f32.xlu1 %v141_v14  ;;  %v142_v19 = vadd.f32 %v137_v17, %v110_v16  ;;  %v299_v18 = vsel %vm240_vm9, 1.0, %v420_v55 }
  0x49   :  { %169 = vadd.xlane.f32.xlu0 %v140_v15 }
  0x4f   :  { %158 = vadd.xlane.f32.xlu2 %v157_v20 }
  0x50   :  { %173 = vadd.xlane.f32.xlu1 %v142_v19 }
  0xa2   :  { %v148_v21 = vpop.xlane.xlu0 %147 }
  0xa3   :  { %v150_v23 = vperm.slane %v148_v21, 2 }
  0xa5   :  { %v152_v24 = vadd.f32 %v150_v23, %v144_v22 }
  0xa7   :  { %154 = vst.msk [vmem:[#allocation2] sm:$0x1] %vm46_vm3, %v152_v24 }
  0xae   :  { %v189_v33 = vld [vmem:[#allocation2] sm:$0x1] }
  0xaf   :  { %v472_v35 = vmul.f32 0.125, %v189_v33 }
  0xb1   :  { %v202_v41 = vperm.slane %v472_v35, 0 }
  0xba   :  { %v176_v27 = vpop.xlane.xlu2 %175 }
  0xbb   :  { %v180_v29 = vadd.f32 %v176_v27, %v168_v25  ;;  %v172_v30 = vpop.xlane.xlu1 %171 }
  0xbc   :  { %v178_v31 = vadd.f32 %v172_v30, %v166_v26  ;;  %v170_v32 = vpop.xlane.xlu0 %169 }
  0xbd   :  { %185 = vst.msk [vmem:[#allocation4 + $0x18] sm:$0xff] %vm49_vm5, %v180_v29  ;;  %v177_v34 = vadd.f32 %v170_v32, %v165_v28 }
  0xbe   :  { %183 = vst.msk [vmem:[#allocation4 + $0x8] sm:$0xff] %vm49_vm5, %v178_v31 }
  0xbf   :  { %182 = vst.msk [vmem:[#allocation4] sm:$0xff] %vm49_vm5, %v177_v34 }
  0xc2   :  { %v159_v37 = vpop.xlane.xlu2 %158 }
  0xc3   :  { %v174_v39 = vpop.xlane.xlu1 %173  ;;  %v161_v40 = vperm.slane %v159_v37, 3 }
  0xc4   :  { %v179_v42 = vadd.f32 %v174_v39, %v167_v36  ;;  %v196_v43 = vld [vmem:[#allocation4 + $0x18] sm:$0xff] }
  0xc5   :  { %v163_v44 = vadd.f32 %v161_v40, %v155_v38  ;;  %v194_v45 = vld [vmem:[#allocation4 + $0x8] sm:$0xff]  ;;  %v200_v46 = vmul.f32 0.125, %v196_v43 }
  0xc6   :  { %184 = vst.msk [vmem:[#allocation4 + $0x10] sm:$0xff] %vm49_vm5, %v179_v42  ;;  %v193_v47 = vld [vmem:[#allocation4] sm:$0xff]  ;;  %v198_v48 = vmul.f32 0.125, %v194_v45 }
  0xc7   :  { %164 = vst.msk [vmem:[#allocation3] sm:$0x1] %vm46_vm3, %v163_v44  ;;  %v197_v49 = vmul.f32 0.125, %v193_v47  ;;  %v207_v50 = vsub.f32 %v202_v41, %v200_v46 }
  0xc8   :  { %v205_v51 = vsub.f32 %v202_v41, %v198_v48 }
  0xc9   :  { %v204_v52 = vsub.f32 %v202_v41, %v197_v49  ;;  %v215_v53 = vmin.f32 %v207_v50, 0.0  ;;  %vm211_vm8 = vcmp.gt.f32.partialorder %v207_v50, 0.0 }
  0xca   :  { %v213_v54 = vmin.f32 %v205_v51, 0.0  ;;  %vm209_vm6 = vcmp.gt.f32.partialorder %v205_v51, 0.0 }
  0xcb   :  { %v212_v56 = vmin.f32 %v204_v52, 0.0  ;;  %v222_v57 = vmul.f32 1.442695, %v215_v53  ;;  %vm208_vm7 = vcmp.gt.f32.partialorder %v204_v52, 0.0 }
  0xcc   :  { %v218_v58 = vmul.f32 1.442695, %v213_v54 }
  0xcd   :  { %v195_v59 = vld [vmem:[#allocation4 + $0x10] sm:$0xff]  ;;  %v216_v60 = vmul.f32 1.442695, %v212_v56  ;;  %330 = vpow2.f32 %v222_v57 }
  0xce   :  { %v199_v61 = vmul.f32 0.125, %v195_v59  ;;  %332 = vpow2.f32 %v218_v58  ;;  %v191_v34 = vld [vmem:[#allocation3] sm:$0x1] }
  0xcf   :  { %334 = vpow2.f32 %v216_v60  ;;  %v192_v37 = vmul.f32 0.125, %v191_v34 }
  0xd0   :  { %v206_v63 = vsub.f32 %v202_v41, %v199_v61 }
  0xd2   :  { %v214_v1 = vmin.f32 %v206_v63, 0.0  ;;  %vm210_vm10 = vcmp.gt.f32.partialorder %v206_v63, 0.0 }
  0xd3   :  { %v331_v3 = vpop.eup %330 }
  0xd4   :  { %v333_v4 = vpop.eup %332  ;;  %v220_v5 = vmul.f32 1.442695, %v214_v1  ;;  %v298_v8 = vadd.f32 -1.0, %v331_v3 }
  0xd5   :  { %v335_v6 = vpop.eup %334  ;;  %v296_v7 = vadd.f32 -1.0, %v333_v4 }
  0xd6   :  { %336 = vpow2.f32 %v220_v5  ;;  %v295_v0 = vadd.f32 -1.0, %v335_v6  ;;  %v231_v12 = vsel %vm211_vm8, %v207_v50, %v298_v8 }
  0xd7   :  { %v229_v10 = vsel %vm209_vm6, %v205_v51, %v296_v7  ;;  %v252_v16 = vsub.f32 0.0, %v231_v12 }
  0xd8   :  { %v228_v11 = vsel %vm208_vm7, %v204_v52, %v295_v0  ;;  %v250_v14 = vsub.f32 0.0, %v229_v10 }
  0xd9   :  { %v249_v13 = vsub.f32 0.0, %v228_v11  ;;  %v256_v23 = vmul.f32 %v299_v18, %v252_v16 }
  0xda   :  { %v258_v20 = vsel %vm49_vm5, %v250_v14, 0.0 }
  0xdb   :  { %v257_v19 = vsel %vm49_vm5, %v249_v13, 0.0  ;;  %v262_v27 = vsel %vm49_vm5, %v256_v23, 0.0 }
  0xdc   :  { %v337_v15 = vpop.eup %336  ;;  %v259_v24 = vadd.f32 %v258_v20, %v257_v19 }
  0xdd   :  { %v297_v17 = vadd.f32 -1.0, %v337_v15 }
  0xdf   :  { %v230_v21 = vsel %vm210_vm10, %v206_v63, %v297_v17 }
  0xe0   :  { %v251_v22 = vsub.f32 0.0, %v230_v21 }
  0xe2   :  { %v260_v25 = vsel %vm49_vm5, %v251_v22, 0.0 }
  0xe3   :  { %v261_v26 = vadd.f32 %v260_v25, %v259_v24 }
  0xe5   :  { %v263_v28 = vadd.f32 %v262_v27, %v261_v26 }
  0xe7   :  { %v264_v29 = vrot.slane %v263_v28, 4 }
  0xe9   :  { %v265_v30 = vadd.f32 %v264_v29, %v263_v28 }
  0xeb   :  { %v266_v31 = vrot.slane %v265_v30, 2 }
  0xed   :  { %v267_v32 = vadd.f32 %v266_v31, %v265_v30 }
  0xef   :  { %v268_v55 = vrot.slane %v267_v32, 1 }
  0xf1   :  { %v269_v33 = vadd.f32 %v268_v55, %v267_v32 }
  0xf3   :  { %v270_v36 = vmul.f32 0.033333335, %v269_v33 }
  0xf5   :  { %v271_v38 = vmul.f32 %v270_v36, %v472_v35 }
  0xf7   :  { %v272_v39 = vadd.f32 %v271_v38, %v472_v35 }
  0xf9   :  { %v273_v40 = vadd.f32 %v272_v39, %v192_v37 }
  0xfb   :  { %274 = vst.msk [vmem:[#allocation10] sm:$0x1] %vm46_vm3, %v273_v40 }
  0xfc   :  { %285 = dma.vmem_to_hbm [thread:$0]  %s281_s1, 16, %s283_s23, [#allocation7]  }
  0xfd   :  { %414 = dma.done.wait [#allocation7], 16  }
  0xfe   :  { %415 = vsyncadd [#allocation7], 4294967280 }
  0xff   :  { %290 = vsyncpa [#allocation6], 1 }
 0x100   :  { %291 = vsyncpa [#allocation9], 1 }
 0x101   :  { %292 = vsyncpa [#allocation7], 1 }

</bundles_post_ra>
